<compile_context>
chip_gen: v7x
topology: tpu7x:2x2x1
jax: 0.10.0
libtpu: 0.0.40
codegen_flags: <defaults>
</compile_context>

<pallas_src>
import math
import functools

import numpy as np
import jax
import jax.numpy as jnp
from jax import lax
from jax.experimental import pallas as pl
from jax.experimental.pallas import tpu as pltpu


def _split_heads(t, num_heads, head_dim):
    """(N, E) -> (H, N, Dh) with a single reshape + transpose (no per-head lane slicing)."""
    n = t.shape[0]
    return jnp.transpose(t.reshape(n, num_heads, head_dim), (1, 0, 2))


def _mhsa_kernel(*refs, num_heads, head_dim, q_tile, seq_len, fuse_qkv, has_attn, kv_tile):
    """Ref layout (static per-config):
      fuse_qkv:  x(1,S,E), wqkv(E,3E), bqkv(1,3E), wo(E,E), bo(1,E)
      otherwise: xq(1,TQ,E), xfull(1,S,E), wq(E,E), bq(1,E), wkv(E,2E), bkv(1,2E), wo(E,E), bo(1,E)
      outputs:   out(1,TQ,E) [, attn(1,H,TQ,S)]
      scratch:   kv(S,2E) bf16 (persists across the qi grid axis), present unless it is unused.
    """
    bf16, f32 = jnp.bfloat16, jnp.float32
    emb = num_heads * head_dim
    scale = 1.0 / math.sqrt(head_dim)

    if fuse_qkv:
        x_ref, wqkv_ref, bqkv_ref, wo_ref, bo_ref = refs[:5]
        rest = list(refs[5:])
    else:
        (xq_ref, xfull_ref, wq_ref, bq_ref,
         wkv_ref, bkv_ref, wo_ref, bo_ref) = refs[:8]
        rest = list(refs[8:])

    out_ref = rest[0]
    attn_ref = rest[1] if has_attn else None
    kv_scr = rest[2] if has_attn and len(rest) > 2 else (rest[1] if not has_attn and len(rest) > 1 else None)

    # ---- Projections (bf16 MXU operands, f32 accumulation). K|V computed once per batch elem.
    if fuse_qkv:
        qkv = jnp.dot(x_ref[0], wqkv_ref[...], preferred_element_type=f32) + bqkv_ref[0]
        q = qkv[:, :emb] * scale                               # fold softmax scale into Q
        kv_all = qkv[:, emb:].astype(bf16)                     # (S, 2E)
        if kv_tile is not None:                                # flash path slices from scratch
            kv_scr[...] = kv_all
    else:
        @pl.when(pl.program_id(1) == 0)
        def _():
            kv = jnp.dot(xfull_ref[0], wkv_ref[...], preferred_element_type=f32) + bkv_ref[0]
            kv_scr[...] = kv.astype(bf16)                      # persistent across q tiles
        q = (jnp.dot(xq_ref[0], wq_ref[...], preferred_element_type=f32) + bq_ref[0]) * scale
        kv_all = kv_scr[...] if kv_tile is None else None

    qh = _split_heads(q, num_heads, head_dim).astype(bf16)     # (H, TQ, Dh)

    if kv_tile is None:
        # ---- Full-S softmax (required to emit attention weights; fine for small S).
        kh = _split_heads(kv_all[:, :emb], num_heads, head_dim)   # (H, S, Dh)
        vh = _split_heads(kv_all[:, emb:], num_heads, head_dim)   # (H, S, Dh)
        s = jnp.einsum("hqd,hkd->hqk", qh, kh, preferred_element_type=f32)
        m = jnp.max(s, axis=-1, keepdims=True)
        e = jnp.exp(s - m)
        denom = jnp.sum(e, axis=-1, keepdims=True)
        attn = e * pl.reciprocal(denom, approx=True)
        # TODO(synk): dropout on attn is identity in eval mode; the module's optional mask
        # argument (mask=None path) is not implemented.
        if has_attn:
            attn_ref[0] = attn.astype(attn_ref.dtype)          # one lane-dense slab store
        ctx = jnp.einsum("hqk,hkd->hqd", attn.astype(bf16), vh, preferred_element_type=f32)
    else:
        # ---- Flash-style online softmax over key tiles (output-only mode): never materializes
        # the (H, TQ, S) f32 scores/exp/attn live set.
        n_kv = seq_len // kv_tile

        def body(kt, carry):
            m_prev, l_prev, acc_prev = carry
            k0 = pl.multiple_of(kt * kv_tile, kv_tile)
            kv_blk = kv_scr[pl.ds(k0, kv_tile), :]             # (TK, 2E) bf16
            kh = _split_heads(kv_blk[:, :emb], num_heads, head_dim)
            vh = _split_heads(kv_blk[:, emb:], num_heads, head_dim)
            s = jnp.einsum("hqd,hkd->hqk", qh, kh, preferred_element_type=f32)
            m_new = jnp.maximum(m_prev, jnp.max(s, axis=-1, keepdims=True))
            alpha = jnp.exp(m_prev - m_new)
            p = jnp.exp(s - m_new)
            l_new = alpha * l_prev + jnp.sum(p, axis=-1, keepdims=True)
            acc_new = alpha * acc_prev + jnp.einsum(
                "hqk,hkd->hqd", p.astype(bf16), vh, preferred_element_type=f32)
            return m_new, l_new, acc_new

        m0 = jnp.full((num_heads, q_tile, 1), -jnp.inf, f32)
        l0 = jnp.zeros((num_heads, q_tile, 1), f32)
        a0 = jnp.zeros((num_heads, q_tile, head_dim), f32)
        _, l_f, acc_f = lax.fori_loop(0, n_kv, body, (m0, l0, a0))
        ctx = acc_f * pl.reciprocal(l_f, approx=True)

    # ---- Merge heads with a single transpose + reshape, then bf16 output projection.
    context = jnp.transpose(ctx, (1, 0, 2)).reshape(q_tile, emb).astype(bf16)
    out = jnp.dot(context, wo_ref[...], preferred_element_type=f32) + bo_ref[0]
    out_ref[0] = out.astype(out_ref.dtype)


def multi_head_self_attention(x, params, num_heads, *, q_tile=None, kv_tile=None,
                              return_attn_weights=True, attn_dtype=jnp.bfloat16):
    """x: (B, S, E); params: PyTorch nn.Linear layout (W:(out,in), y = x @ W.T + b).

    Returns (output, attn_weights) like the PyTorch module when return_attn_weights=True,
    otherwise only output (skips the O(S^2) writeback and enables kv_tile online softmax).
    attn_weights default to bf16 storage (halves HBM/VMEM traffic); the softmax uses the EUP
    approximate reciprocal so stored rows sum to 1 +- ~1e-3 rather than exactly 1.
    """
    B, S, E = x.shape
    assert E % num_heads == 0, "emb_dim must be divisible by num_heads"
    head_dim = E // num_heads

    if q_tile is None:
        # Keep the per-tile softmax live set + KV scratch comfortably inside v7x's 64 MiB.
        tq = S if (S <= 256 or S % 256 != 0) else 256
    else:
        tq = q_tile
    assert S % tq == 0, "q_tile must divide seq_len"
    assert tq == S or tq % 8 == 0, "q_tile must be a multiple of 8 (sublane) or the full seq"
    n_q_tiles = S // tq
    fuse_qkv = n_q_tiles == 1

    use_flash = (not return_attn_weights) and (kv_tile is not None) and kv_tile < S
    if use_flash:
        assert S % kv_tile == 0 and kv_tile % 8 == 0, "kv_tile must divide S, multiple of 8"

    bf16, f32 = jnp.bfloat16, jnp.float32
    x_b = x.astype(bf16)
    wq_t = params["wq"].T.astype(bf16)
    wk_t = params["wk"].T.astype(bf16)
    wv_t = params["wv"].T.astype(bf16)
    wo_t = params["wo"].T.astype(bf16)
    bo = params["bo"].reshape(1, E).astype(f32)

    kernel = functools.partial(
        _mhsa_kernel, num_heads=num_heads, head_dim=head_dim, q_tile=tq, seq_len=S,
        fuse_qkv=fuse_qkv, has_attn=return_attn_weights,
        kv_tile=kv_tile if use_flash else None)

    def const_spec(shape):
        return pl.BlockSpec(shape, lambda b, qi: (0,) * len(shape))

    x_full_spec = pl.BlockSpec((1, S, E), lambda b, qi: (b, 0, 0))   # fetched once per b
    if fuse_qkv:
        wqkv_t = jnp.concatenate([wq_t, wk_t, wv_t], axis=1)                       # (E, 3E)
        bqkv = jnp.concatenate([params["bq"], params["bk"], params["bv"]]
                               ).reshape(1, 3 * E).astype(f32)
        inputs = (x_b, wqkv_t, bqkv, wo_t, bo)
        in_specs = [x_full_spec,
                    const_spec((E, 3 * E)), const_spec((1, 3 * E)),
                    const_spec((E, E)), const_spec((1, E))]
    else:
        wkv_t = jnp.concatenate([wk_t, wv_t], axis=1)                              # (E, 2E)
        bq = params["bq"].reshape(1, E).astype(f32)
        bkv = jnp.concatenate([params["bk"], params["bv"]]).reshape(1, 2 * E).astype(f32)
        inputs = (x_b, x_b, wq_t, bq, wkv_t, bkv, wo_t, bo)
        in_specs = [pl.BlockSpec((1, tq, E), lambda b, qi: (b, qi, 0)),  # Q rows (per tile)
                    x_full_spec,                                          # full seq (for KV)
                    const_spec((E, E)), const_spec((1, E)),
                    const_spec((E, 2 * E)), const_spec((1, 2 * E)),
                    const_spec((E, E)), const_spec((1, E))]

    out_spec = pl.BlockSpec((1, tq, E), lambda b, qi: (b, qi, 0))
    if return_attn_weights:
        out_shape = (jax.ShapeDtypeStruct((B, S, E), x.dtype),
                     jax.ShapeDtypeStruct((B, num_heads, S, S), attn_dtype))
        out_specs = (out_spec,
                     pl.BlockSpec((1, num_heads, tq, S), lambda b, qi: (b, 0, qi, 0)))
    else:
        out_shape = jax.ShapeDtypeStruct((B, S, E), x.dtype)
        out_specs = out_spec

    need_scratch = (not fuse_qkv) or use_flash
    scratch_shapes = [pltpu.VMEM((S, 2 * E), bf16)] if need_scratch else []

    # ---- VMEM budget: double-buffered pipeline blocks, persistent KV scratch, and the
    # in-kernel f32 intermediates (projection accumulators + softmax live set).
    itemsize_out = np.dtype(x.dtype).itemsize
    itemsize_attn = np.dtype(attn_dtype).itemsize
    if fuse_qkv:
        blk_in = S * E * 2 + (E * 3 * E + E * E) * 2 + (3 * E + E) * 4
        proj_f32 = S * 3 * E * 4
    else:
        blk_in = (tq * E + S * E) * 2 + (2 * E * E + E * 2 * E) * 2 + 4 * E * 4
        proj_f32 = S * 2 * E * 4
    blk_out = tq * E * itemsize_out + (num_heads * tq * S * itemsize_attn
                                       if return_attn_weights else 0)
    kv_scratch_b = S * 2 * E * 2 if need_scratch else 0
    if use_flash:
        softmax_f32 = num_heads * tq * (3 * kv_tile + 2 * head_dim + 2) * 4
    else:
        softmax_f32 = num_heads * tq * (3 * S + head_dim) * 4
    est = 2 * (blk_in + blk_out) + kv_scratch_b + proj_f32 + softmax_f32
    # Cap below v7x's 64 MiB physical per-TC VMEM; v5e/v6e have 128 MiB so this is safe.
    vmem_limit = int(min(max(int(1.25 * est) + (2 << 20), 32 << 20), 56 << 20))

    return pl.pallas_call(
        kernel,
        out_shape=out_shape,
        grid_spec=pltpu.PrefetchScalarGridSpec(
            num_scalar_prefetch=0,
            grid=(B, n_q_tiles),
            in_specs=in_specs,
            out_specs=out_specs,
            scratch_shapes=scratch_shapes,
        ),
        compiler_params=pltpu.CompilerParams(
            # B "parallel" feeds both v7x TensorCores; qi must be "arbitrary" (sequential)
            # so the KV scratch written at qi == 0 is valid for every later q-tile of b.
            dimension_semantics=("parallel", "arbitrary"),
            vmem_limit_bytes=vmem_limit,
        ),
    )(*inputs)


# ----------------------------- reference & self-test -----------------------------

def _init_linear(key, out_features, in_features):
    # Deterministic init mimicking PyTorch nn.Linear default (uniform +-1/sqrt(fan_in)).
    kw, kb = jax.random.split(key)
    bound = 1.0 / math.sqrt(in_features)
    w = jax.random.uniform(kw, (out_features, in_features), jnp.float32, -bound, bound)
    b = jax.random.uniform(kb, (out_features,), jnp.float32, -bound, bound)
    return w, b


def _make_params(key, E):
    kq, kk, kv, ko = jax.random.split(key, 4)
    wq, bq = _init_linear(kq, E, E)
    wk, bk = _init_linear(kk, E, E)
    wv, bv = _init_linear(kv, E, E)
    wo, bo = _init_linear(ko, E, E)
    return dict(wq=wq, bq=bq, wk=wk, bk=bk, wv=wv, bv=bv, wo=wo, bo=bo)


def _reference(x, params, num_heads):
    # Pure-JAX f32 reference matching the PyTorch forward (dropout in eval mode, mask=None).
    B, S, E = x.shape
    Dh = E // num_heads
    lin = lambda t, w, b: t @ w.T + b
    q = lin(x, params["wq"], params["bq"]).reshape(B, S, num_heads, Dh).transpose(0, 2, 1, 3)
    k = lin(x, params["wk"], params["bk"]).reshape(B, S, num_heads, Dh).transpose(0, 2, 1, 3)
    v = lin(x, params["wv"], params["bv"]).reshape(B, S, num_heads, Dh).transpose(0, 2, 1, 3)
    scores = jnp.einsum("bhqd,bhkd->bhqk", q, k) / math.sqrt(Dh)
    attn = jax.nn.softmax(scores, axis=-1)
    ctx = jnp.einsum("bhqk,bhkd->bhqd", attn, v).transpose(0, 2, 1, 3).reshape(B, S, E)
    return lin(ctx, params["wo"], params["bo"]), attn


def _run_case(B, S, E, H, key, *, q_tile=None, kv_tile=None):
    kx, kp = jax.random.split(key)
    x = jax.random.normal(kx, (B, S, E), jnp.float32)
    params = _make_params(kp, E)
    ref_out, ref_attn = _reference(x, params, H)

    # Full path (returns attention weights, like the PyTorch module).
    out, attn = multi_head_self_attention(x, params, H, q_tile=q_tile)
    out, attn = jax.block_until_ready((out, attn))
    assert out.shape == (B, S, E) and attn.shape == (B, H, S, S)
    # bf16 MXU operands + bf16 attn storage + EUP approx reciprocal -> bf16-level tolerances.
    assert jnp.allclose(out, ref_out, atol=5e-2, rtol=5e-2), \
        float(jnp.max(jnp.abs(out - ref_out)))
    attn_f32 = attn.astype(jnp.float32)
    assert jnp.allclose(attn_f32, ref_attn, atol=3e-2, rtol=3e-2), \
        float(jnp.max(jnp.abs(attn_f32 - ref_attn)))

    # Output-only path (skips O(S^2) writeback; uses online softmax when kv_tile is set).
    out_only = multi_head_self_attention(x, params, H, q_tile=q_tile, kv_tile=kv_tile,
                                         return_attn_weights=False)
    out_only = jax.block_until_ready(out_only)
    assert out_only.shape == (B, S, E)
    assert jnp.allclose(out_only, ref_out, atol=5e-2, rtol=5e-2), \
        float(jnp.max(jnp.abs(out_only - ref_out)))


if __name__ == "__main__":
    root = jax.random.PRNGKey(0)
    k1, k2, k3 = jax.random.split(root, 3)
    _run_case(2, 8, 32, 4, k1)                            # single q tile -> fused QKV projection
    _run_case(2, 16, 32, 4, k2, q_tile=8)                 # KV scratch reused across q tiles
    _run_case(2, 64, 32, 4, k3, q_tile=16, kv_tile=16)    # + flash/online-softmax output path
    print("KERNEL_OK")
</pallas_src>

<mosaic_0001>
module attributes {stable_mosaic.version = 11 : i64} {
  func.func @_mhsa_kernel(%arg0: i32, %arg1: i32, %arg2: memref<1x8x32xbf16, #tpu.memory_space<vmem>>, %arg3: memref<32x96xbf16, #tpu.memory_space<vmem>>, %arg4: memref<1x96xf32, #tpu.memory_space<vmem>>, %arg5: memref<32x32xbf16, #tpu.memory_space<vmem>>, %arg6: memref<1x32xf32, #tpu.memory_space<vmem>>, %arg7: memref<1x8x32xf32, #tpu.memory_space<vmem>>, %arg8: memref<1x4x8x8xbf16, #tpu.memory_space<vmem>>) attributes {dimension_semantics = [#tpu.dimension_semantics<parallel>, #tpu.dimension_semantics<arbitrary>], iteration_bounds = array<i64: 2, 1>, scalar_prefetch = 0 : i64, scratch_operands = 0 : i64, tpu.core_type = #tpu.core_type<tc>, window_params = [{transform_indices = @transform_0, window_bounds = array<i64: 1, 8, 32>}, {pipeline_mode = #tpu.pipeline_mode<synchronous>, transform_indices = @transform_1, window_bounds = array<i64: 32, 96>}, {pipeline_mode = #tpu.pipeline_mode<synchronous>, transform_indices = @transform_2, window_bounds = array<i64: 1, 96>}, {pipeline_mode = #tpu.pipeline_mode<synchronous>, transform_indices = @transform_3, window_bounds = array<i64: 32, 32>}, {pipeline_mode = #tpu.pipeline_mode<synchronous>, transform_indices = @transform_4, window_bounds = array<i64: 1, 32>}, {transform_indices = @transform_5, window_bounds = array<i64: 1, 8, 32>}, {transform_indices = @transform_6, window_bounds = array<i64: 1, 4, 8, 8>}]} {
    %c0 = arith.constant 0 : index
    %c0_0 = arith.constant 0 : index
    %c0_1 = arith.constant 0 : index
    %0 = vector.load %arg2[%c0, %c0_0, %c0_1] : memref<1x8x32xbf16, #tpu.memory_space<vmem>>, vector<1x8x32xbf16>
    %1 = vector.shape_cast %0 : vector<1x8x32xbf16> to vector<8x32xbf16>
    %c0_2 = arith.constant 0 : index
    %c0_3 = arith.constant 0 : index
    %2 = vector.load %arg3[%c0_2, %c0_3] : memref<32x96xbf16, #tpu.memory_space<vmem>>, vector<32x96xbf16>
    %cst = arith.constant dense<0.000000e+00> : vector<8x96xf32>
    %3 = tpu.matmul %1, %2, %cst {dimension_numbers = #tpu.dot_dimension_numbers<[1], [0], [0], [1], [0, 0, 1, 1], [], []>} : vector<8x32xbf16>, vector<32x96xbf16>, vector<8x96xf32> -> vector<8x96xf32>
    %c0_4 = arith.constant 0 : index
    %c0_5 = arith.constant 0 : index
    %4 = vector.load %arg4[%c0_4, %c0_5] : memref<1x96xf32, #tpu.memory_space<vmem>>, vector<1x96xf32>
    %5 = vector.shape_cast %4 : vector<1x96xf32> to vector<96xf32>
    %6 = vector.shape_cast %5 : vector<96xf32> to vector<1x96xf32>
    %7 = vector.broadcast %6 : vector<1x96xf32> to vector<8x96xf32>
    %8 = arith.addf %3, %7 : vector<8x96xf32>
    %9 = vector.extract_strided_slice %8 {offsets = [0, 0], sizes = [8, 32], strides = [1, 1]} : vector<8x96xf32> to vector<8x32xf32>
    %cst_6 = arith.constant 0.353553385 : f32
    %10 = vector.broadcast %cst_6 : f32 to vector<8x32xf32>
    %11 = arith.mulf %9, %10 : vector<8x32xf32>
    %12 = vector.extract_strided_slice %8 {offsets = [0, 32], sizes = [8, 64], strides = [1, 1]} : vector<8x96xf32> to vector<8x64xf32>
    %13 = arith.truncf %12 : vector<8x64xf32> to vector<8x64xbf16>
    %14 = vector.shape_cast %11 : vector<8x32xf32> to vector<8x4x8xf32>
    %15 = tpu.transpose %14, [1, 0, 2] : vector<8x4x8xf32> -> vector<4x8x8xf32>
    %16 = arith.truncf %15 : vector<4x8x8xf32> to vector<4x8x8xbf16>
    %17 = vector.extract_strided_slice %13 {offsets = [0, 0], sizes = [8, 32], strides = [1, 1]} : vector<8x64xbf16> to vector<8x32xbf16>
    %18 = vector.shape_cast %17 : vector<8x32xbf16> to vector<8x4x8xbf16>
    %19 = tpu.transpose %18, [1, 0, 2] : vector<8x4x8xbf16> -> vector<4x8x8xbf16>
    %20 = vector.extract_strided_slice %13 {offsets = [0, 32], sizes = [8, 32], strides = [1, 1]} : vector<8x64xbf16> to vector<8x32xbf16>
    %21 = vector.shape_cast %20 : vector<8x32xbf16> to vector<8x4x8xbf16>
    %22 = tpu.transpose %21, [1, 0, 2] : vector<8x4x8xbf16> -> vector<4x8x8xbf16>
    "tpu.trace_start"() <{level = 10 : i32, message = "hqd,hkd->hqk"}> : () -> ()
    %cst_7 = arith.constant dense<0.000000e+00> : vector<4x8x8xf32>
    %23 = tpu.matmul %16, %19, %cst_7 {dimension_numbers = #tpu.dot_dimension_numbers<[2], [2], [1], [1], [0, 0, 0, 1, 1, 1], [0], [0]>} : vector<4x8x8xbf16>, vector<4x8x8xbf16>, vector<4x8x8xf32> -> vector<4x8x8xf32>
    "tpu.trace_stop"() : () -> ()
    %cst_8 = arith.constant dense<0xFF800000> : vector<4x8xf32>
    %24 = vector.multi_reduction <maximumf>, %23, %cst_8 [2] : vector<4x8x8xf32> to vector<4x8xf32>
    %25 = vector.shape_cast %24 : vector<4x8xf32> to vector<4x8x1xf32>
    %26 = vector.broadcast %25 : vector<4x8x1xf32> to vector<4x8x8xf32>
    %27 = arith.subf %23, %26 : vector<4x8x8xf32>
    %28 = math.exp %27 : vector<4x8x8xf32>
    %cst_9 = arith.constant dense<0.000000e+00> : vector<4x8xf32>
    %29 = vector.multi_reduction <add>, %28, %cst_9 [2] : vector<4x8x8xf32> to vector<4x8xf32>
    %30 = vector.shape_cast %29 : vector<4x8xf32> to vector<4x8x1xf32>
    %31 = tpu.reciprocal %30 {approx = true} : vector<4x8x1xf32> -> vector<4x8x1xf32>
    %32 = vector.broadcast %31 : vector<4x8x1xf32> to vector<4x8x8xf32>
    %33 = arith.mulf %28, %32 : vector<4x8x8xf32>
    %34 = arith.truncf %33 : vector<4x8x8xf32> to vector<4x8x8xbf16>
    %c0_10 = arith.constant 0 : index
    %c0_11 = arith.constant 0 : index
    %c0_12 = arith.constant 0 : index
    %c0_13 = arith.constant 0 : index
    %35 = vector.load %arg8[%c0_10, %c0_11, %c0_12, %c0_13] : memref<1x4x8x8xbf16, #tpu.memory_space<vmem>>, vector<1x4x8x8xbf16>
    %36 = vector.shape_cast %35 : vector<1x4x8x8xbf16> to vector<4x8x8xbf16>
    %37 = vector.shape_cast %34 : vector<4x8x8xbf16> to vector<1x4x8x8xbf16>
    tpu.vector_store %arg8[%c0_10, %c0_11, %c0_12, %c0_13], %37 {strides = array<i32>} : memref<1x4x8x8xbf16, #tpu.memory_space<vmem>>, vector<1x4x8x8xbf16>,
    %38 = arith.truncf %33 : vector<4x8x8xf32> to vector<4x8x8xbf16>
    "tpu.trace_start"() <{level = 10 : i32, message = "hqk,hkd->hqd"}> : () -> ()
    %cst_14 = arith.constant dense<0.000000e+00> : vector<4x8x8xf32>
    %39 = tpu.matmul %38, %22, %cst_14 {dimension_numbers = #tpu.dot_dimension_numbers<[2], [1], [1], [2], [0, 0, 0, 1, 1, 2], [0], [0]>} : vector<4x8x8xbf16>, vector<4x8x8xbf16>, vector<4x8x8xf32> -> vector<4x8x8xf32>
    "tpu.trace_stop"() : () -> ()
    %40 = tpu.transpose %39, [1, 0, 2] : vector<4x8x8xf32> -> vector<8x4x8xf32>
    %41 = vector.shape_cast %40 : vector<8x4x8xf32> to vector<8x32xf32>
    %42 = arith.truncf %41 : vector<8x32xf32> to vector<8x32xbf16>
    %c0_15 = arith.constant 0 : index
    %c0_16 = arith.constant 0 : index
    %43 = vector.load %arg5[%c0_15, %c0_16] : memref<32x32xbf16, #tpu.memory_space<vmem>>, vector<32x32xbf16>
    %cst_17 = arith.constant dense<0.000000e+00> : vector<8x32xf32>
    %44 = tpu.matmul %42, %43, %cst_17 {dimension_numbers = #tpu.dot_dimension_numbers<[1], [0], [0], [1], [0, 0, 1, 1], [], []>} : vector<8x32xbf16>, vector<32x32xbf16>, vector<8x32xf32> -> vector<8x32xf32>
    %c0_18 = arith.constant 0 : index
    %c0_19 = arith.constant 0 : index
    %45 = vector.load %arg6[%c0_18, %c0_19] : memref<1x32xf32, #tpu.memory_space<vmem>>, vector<1x32xf32>
    %46 = vector.shape_cast %45 : vector<1x32xf32> to vector<32xf32>
    %47 = vector.shape_cast %46 : vector<32xf32> to vector<1x32xf32>
    %48 = vector.broadcast %47 : vector<1x32xf32> to vector<8x32xf32>
    %49 = arith.addf %44, %48 : vector<8x32xf32>
    %c0_20 = arith.constant 0 : index
    %c0_21 = arith.constant 0 : index
    %c0_22 = arith.constant 0 : index
    %50 = vector.load %arg7[%c0_20, %c0_21, %c0_22] : memref<1x8x32xf32, #tpu.memory_space<vmem>>, vector<1x8x32xf32>
    %51 = vector.shape_cast %50 : vector<1x8x32xf32> to vector<8x32xf32>
    %52 = vector.shape_cast %49 : vector<8x32xf32> to vector<1x8x32xf32>
    tpu.vector_store %arg7[%c0_20, %c0_21, %c0_22], %52 {strides = array<i32>} : memref<1x8x32xf32, #tpu.memory_space<vmem>>, vector<1x8x32xf32>,
    return
  }
  func.func @transform_0(%arg0: i32, %arg1: i32) -> (i32, i32, i32) {
    %c0_i32 = arith.constant 0 : i32
    %c0_i32_0 = arith.constant 0 : i32
    %c0_i32_1 = arith.constant 0 : i32
    return %arg0, %c0_i32, %c0_i32_0 : i32, i32, i32
  }
  func.func @transform_1(%arg0: i32, %arg1: i32) -> (i32, i32) {
    %c0_i32 = arith.constant 0 : i32
    %c0_i32_0 = arith.constant 0 : i32
    %c0_i32_1 = arith.constant 0 : i32
    return %c0_i32, %c0_i32_0 : i32, i32
  }
  func.func @transform_2(%arg0: i32, %arg1: i32) -> (i32, i32) {
    %c0_i32 = arith.constant 0 : i32
    %c0_i32_0 = arith.constant 0 : i32
    %c0_i32_1 = arith.constant 0 : i32
    return %c0_i32, %c0_i32_0 : i32, i32
  }
  func.func @transform_3(%arg0: i32, %arg1: i32) -> (i32, i32) {
    %c0_i32 = arith.constant 0 : i32
    %c0_i32_0 = arith.constant 0 : i32
    %c0_i32_1 = arith.constant 0 : i32
    return %c0_i32, %c0_i32_0 : i32, i32
  }
  func.func @transform_4(%arg0: i32, %arg1: i32) -> (i32, i32) {
    %c0_i32 = arith.constant 0 : i32
    %c0_i32_0 = arith.constant 0 : i32
    %c0_i32_1 = arith.constant 0 : i32
    return %c0_i32, %c0_i32_0 : i32, i32
  }
  func.func @transform_5(%arg0: i32, %arg1: i32) -> (i32, i32, i32) {
    %c0_i32 = arith.constant 0 : i32
    %c0_i32_0 = arith.constant 0 : i32
    return %arg0, %arg1, %c0_i32 : i32, i32, i32
  }
  func.func @transform_6(%arg0: i32, %arg1: i32) -> (i32, i32, i32, i32) {
    %c0_i32 = arith.constant 0 : i32
    %c0_i32_0 = arith.constant 0 : i32
    %c0_i32_1 = arith.constant 0 : i32
    return %arg0, %c0_i32, %arg1, %c0_i32_0 : i32, i32, i32, i32
  }
}

</mosaic_0001>

<bundles_post_ra>
// kernel: tpu_custom_call.1
= control target key start
LH: loop header
LB: loop body
LE: loop exit
PB: predicated region body
PF: predicated region fallthrough
CT: control target
= control target key end

     0   :  { %12 = vsyncpa [#allocation3], 0  ;;  %s2695_s0 = inlined_call_operand.hbm [shape: bf16[2,8,32], index: 0, kind: input, shape index: {}]   ;;  %s2696_s1 = inlined_call_operand.hbm [shape: bf16[32,96], index: 1, kind: input, shape index: {}]   ;;  %s2697_s2 = inlined_call_operand.vmem [shape: f32[1,96], index: 2, kind: input, shape index: {}]   ;;  %s2698_s3 = inlined_call_operand.hbm [shape: bf16[32,32], index: 3, kind: input, shape index: {}]   ;;  %s2699_s4 = inlined_call_operand.vmem [shape: f32[1,32], index: 4, kind: input, shape index: {}]   ;;  %s2700_s5 = inlined_call_operand.hbm [shape: f32[2,8,32], index: 5, kind: output, shape index: {0}]   ;;  %s2701_s6 = inlined_call_operand.hbm [shape: bf16[2,4,8,8], index: 6, kind: output, shape index: {1}]  }
   0x1   :  { %14 = vsyncpa [#allocation3 + $0x1], 0 }
   0x2   :  { %15 = vsyncpa [#allocation6], 0 }
   0x3   :  { %16 = vsyncpa [#allocation4], 0 }
   0x4   :  { %18 = vsyncpa [#allocation4 + $0x1], 0 }
   0x5   :  { %19 = vsyncpa [#allocation10], 0 }
   0x6   :  { %21 = vsyncpa [#allocation10 + $0x1], 0  ;;  %s2218_s21 = smov 0   ;;  %s2220_s22 = smov 0  }
   0x7   :  { %s2222_s23 = smov 0   ;;  %s2224_s24 = smov 0  }
   0x8   :  { %s2226_s25 = smov 0   ;;  %s2228_s26 = smov 0  }
   0x9 LB: > { %s1704_s27 = sadd.s32 4294967295, %s2160_s26   ;;  %s1705_s28 = sadd.s32 4294967294, %s2160_s26   ;;  %s2160_s26 = sphi %s2228_s26, %s27_s26   ;;  %s2156_s25 = sphi %s2226_s25, %s2726_s25   ;;  %s2152_s24 = sphi %s2224_s24, %s2725_s24   ;;  %s2148_s23 = sphi %s2222_s23, %s2724_s23   ;;  %s2144_s22 = sphi %s2220_s22, %s2723_s22   ;;  %s2140_s21 = sphi %s2218_s21, %s2722_s21  }
   0xa   : > { %p59_p0 = scmp.ne.s32.totalorder %s2144_s22, %s2140_s21  ;;  %p2252_p1 = scmp.eq.s32.totalorder %s1704_s27, 0 }
   0xb   : > { %p2256_p2 = scmp.eq.s32.totalorder %s1704_s27, 1  ;;  %p175_p3 = scmp.eq.s32.totalorder %s1705_s28, 1 }
   0xc   : > { %s2707_s29 = scalar_select %p2252_p1, 1, 0 }
   0xd   : > { %p2262_p4 = por %p2252_p1, %p59_p0  ;;  %p1706_p5 = scmp.ge.s32.totalorder %s2160_s26, 1 }
   0xe   : > { %p2267_p6 = por %p175_p3, %p59_p0  ;;  %p210_p7 = scmp.lt.s32.totalorder %s2160_s26, 3 }
   0xf   : > { %s2709_s7 = scalar_select %p2262_p4, 1, 0 }
  0x10   : > { %s2710_s8 = scalar_select %p2267_p6, 1, 0 }
  0x11   : > { %p2272_p8 = pnand %p1706_p5, %p210_p7  ;;  %s2162_s10 = smov [#allocation5]  }
  0x12   : > { %2711 = sst [smem:[#allocation15_spill]] %s2710_s8  ;;  %s222_s11 = sshll.u32 %s2162_s10, 4  ;;  %s2276_s11 = int_to_ptr.vmem [resolvable:$true] %s222_s11 }
  0x13   : > { %p1846_p9 = pneg %p2272_p8  ;;  %s2163_s13 = smov [#allocation7]  }
  0x14   : > { %s238_s14 = sshll.u32 %s2163_s13, 4  ;;  %s1956_s17 = scalar_lea.hbm %s2696_s1, 256  ;;  %s2287_s14 = int_to_ptr.vmem [resolvable:$true] %s238_s14 }
  0x15   : > { %p2283_p11 = pnand %p1846_p9, %p2252_p1  ;;  %p1957_p12 = scmp.ne.s32.totalorder %s2696_s1, %s1956_s17 }
  0x16   : > { %p1963_p5 = scmp.lt.u32.totalorder %s1956_s17, %s2696_s1 }
  0x17   : > { %p1958_p13 = pneg %p2283_p11 }
  0x19   : > { %p1959_p0 = pnand %p1958_p13, %p1957_p12 }
  0x1b   : > { %p1960_p3 = pneg %p1959_p0 }
  0x1d   : > { %p1965_p7 = pnand %p1963_p5, %p1960_p3 }
  0x1f   : > { %1968 = shalt.err (!%p1965_p7)
}
  0x20   : > { %s1969_s28 = scalar_lea.vmem %s2276_s11, 256  ;;  %p1977_p1 = scmp.lt.s32.totalorder %s2276_s11, %s2276_s11 }
  0x21   : > { %p1970_p9 = scmp.ne.s32.totalorder %s2276_s11, %s1969_s28  ;;  %p1978_p12 = scmp.lt.s32.totalorder %s1969_s28, %s1969_s28 }
  0x23   : > { %p1972_p10 = pnand %p1970_p9, %p1958_p13  ;;  %p1979_p0 = por %p1978_p12, %p1977_p1 }
  0x25   : > { %p1973_p6 = pneg %p1972_p10 }
  0x27   : > { %p1980_p4 = pnand %p1979_p0, %p1973_p6 }
  0x29   : > { %1983 = shalt.err (!%p1980_p4)
}
  0x2a   : > { %s2164_s10 = smov 64   ;;  %s2165_s13 = smov 4  }
  0x2b   : > { %1849 = dma.hbm_to_vmem [thread:$0]  (!%p2283_p11), %s2696_s1, 256, %s2276_s11, [#allocation6], %s2164_s10, %s2164_s10, %s2165_s13  }
  0x2c   : > { %s1984_s19 = scalar_lea.hbm %s2698_s3, 256 }
  0x2d   : > { %p1985_p1 = scmp.ne.s32.totalorder %s2698_s3, %s1984_s19  ;;  %p1991_p10 = scmp.lt.u32.totalorder %s1984_s19, %s2698_s3 }
  0x2f   : > { %p1987_p4 = pnand %p1985_p1, %p1958_p13 }
  0x31   : > { %p1988_p6 = pneg %p1987_p4 }
  0x33   : > { %p1993_p3 = pnand %p1991_p10, %p1988_p6 }
  0x35   : > { %1996 = shalt.err (!%p1993_p3)
}
  0x36   : > { %s1997_s11 = scalar_lea.vmem %s2287_s14, 256  ;;  %p2005_p12 = scmp.lt.s32.totalorder %s2287_s14, %s2287_s14 }
  0x37   : > { %p1998_p5 = scmp.ne.s32.totalorder %s2287_s14, %s1997_s11  ;;  %p2006_p0 = scmp.lt.s32.totalorder %s1997_s11, %s1997_s11 }
  0x39   : > { %p2000_p7 = pnand %p1998_p5, %p1958_p13  ;;  %p2007_p1 = por %p2006_p0, %p2005_p12 }
  0x3b   : > { %p2001_p9 = pneg %p2000_p7 }
  0x3d   : > { %p2008_p4 = pnand %p2007_p1, %p2001_p9 }
  0x3f   : > { %2011 = shalt.err (!%p2008_p4)
}
  0x40   : > { %1852 = dma.hbm_to_vmem [thread:$0]  (!%p2283_p11), %s2698_s3, 256, %s2287_s14, [#allocation6], %s2164_s10, %s2164_s10, %s2165_s13  }
  0x41   : > { %s39_s16 = sadd.s32 1, %s2156_s25  ;;  %s46_s17 = sadd.s32 1, %s2148_s23 }
  0x42   : > { %p41_p13 = scmp.ge.s32.totalorder %s39_s16, 2  ;;  %p53_p6 = scmp.ne.s32.totalorder %s2148_s23, %s2144_s22 }
  0x43   : > { %p54_p10 = scmp.eq.s32.totalorder %s2160_s26, 0  ;;  %p1866_p3 = scmp.lt.s32.totalorder %s2160_s26, 2 }
  0x44   : > { %s2728_s16 = smov (%p41_p13, %s39_s16), 0  ;;  %p2351_p7 = por %p2256_p2, %p53_p6 }
  0x45   : > { %p55_p5 = por %p54_p10, %p53_p6  ;;  %s43_s18 = ssub.s32 %s2156_s25, %s2728_s16 }
  0x46   : > { %s2714_s12 = scalar_select %p2351_p7, 1, 0 }
  0x47   : > { %s255_s19 = sand.u32 1, %s2148_s23   ;;  %p44_p9 = scmp.eq.s32.totalorder %s43_s18, 0 }
  0x48   : > { %s1710_s14 = sshll.u32 %s255_s19, 2  ;;  %s1711_s10 = sshll.u32 %s2156_s25, 6 }
  0x49   : > { %s2360_s13 = scalar_select %p44_p9, %s2148_s23, %s46_s17  }
  0x4a   : > { %s2365_s28 = scalar_lea.hbm %s2695_s0, %s1711_s10  ;;  %s259_s30 = scalar_lea.vmem [#allocation2], %s1710_s14 }
  0x4b   : > { %s266_s11 = sshll.u32 %s259_s30, 4  ;;  %p2369_p2 = pnand %p1866_p3, %p55_p5  ;;  %s2373_s11 = int_to_ptr.vmem [resolvable:$true] %s266_s11 }
  0x4c   : > { %s256_s15 = scalar_lea.sflag [#allocation3], %s255_s19  ;;  %s2012_s17 = scalar_lea.hbm %s2365_s28, 64 }
  0x4d   : > { %p2013_p11 = scmp.ne.s32.totalorder %s2365_s28, %s2012_s17  ;;  %p2014_p12 = pneg %p2369_p2 }
  0x4e   : > { %s2017_s10 = scalar_lea.hbm %s2695_s0, 128  ;;  %p2018_p4 = scmp.lt.u32.totalorder %s2365_s28, %s2695_s0 }
  0x4f   : > { %p2015_p0 = pnand %p2014_p12, %p2013_p11  ;;  %p2019_p13 = scmp.lt.u32.totalorder %s2017_s10, %s2012_s17 }
  0x50   : > { %p2021_p10 = scmp.lt.u32.totalorder %s2012_s17, %s2365_s28 }
  0x51   : > { %p2016_p1 = pneg %p2015_p0  ;;  %p2020_p6 = por %p2019_p13, %p2018_p4 }
  0x53   : > { %p2022_p3 = por %p2021_p10, %p2020_p6 }
  0x55   : > { %p2023_p5 = pnand %p2022_p3, %p2016_p1 }
  0x57   : > { %2026 = shalt.err (!%p2023_p5)
}
  0x58   : > { %s2027_s19 = scalar_lea.vmem %s2373_s11, 64  ;;  %s2166_s30 = smov [#allocation2]  }
  0x59   : > { %p2028_p9 = scmp.ne.s32.totalorder %s2373_s11, %s2027_s19  ;;  %s2032_s18 = sshll.u32 %s2166_s30, 4  ;;  %s2033_s18 = int_to_ptr.vmem [resolvable:$false] %s2032_s18 }
  0x5a   : > { %s2034_s14 = scalar_lea.vmem %s2033_s18, 128  ;;  %p2035_p7 = scmp.lt.s32.totalorder %s2373_s11, %s2033_s18 }
  0x5b   : > { %p2030_p11 = pnand %p2028_p9, %p2014_p12  ;;  %p2036_p4 = scmp.lt.s32.totalorder %s2034_s14, %s2027_s19 }
  0x5d   : > { %p2031_p0 = pneg %p2030_p11  ;;  %p2037_p13 = por %p2036_p4, %p2035_p7 }
  0x5f   : > { %p2038_p6 = pnand %p2037_p13, %p2031_p0 }
  0x61   : > { %2041 = shalt.err (!%p2038_p6)
}
  0x62   : > { %1856 = dma.hbm_to_vmem [thread:$0]  (!%p2369_p2), %s2365_s28, 64, %s2373_s11, %s256_s15  }
  0x63   : > { %275 = sbr.rel (%p2272_p8) target bundleno = 1767 (0x6e7), region = 40  ;;  %s2403_s17 = sand.u32 (!%p2272_p8), 1, %s2144_s22  }
  0x64   : > { %s1713_s10 = sshll.u32 (!%p2272_p8), %s2403_s17, 2  ;;  %s278_s20 = scalar_lea.sflag (!%p2272_p8), [#allocation3], %s2403_s17 }
  0x65   : > { %s281_s27 = scalar_lea.vmem (!%p2272_p8), [#allocation2], %s1713_s10  ;;  %p2716_p7 = scmp.ne.s32.totalorder (!%p2272_p8), %s2709_s7, 0 }
  0x6a   : > { %2123 = dma.done.wait (%p2716_p7), %s278_s20, 64  }
  0x6b   : > { %2125 = vsyncadd (%p2716_p7), %s278_s20, 4294967232  ;;  %p2717_p12 = scmp.ne.s32.totalorder %s2707_s29, 0 }
  0x6d   : > { %2127 = dma.done.wait (%p2717_p12), [#allocation6], 512  }
  0x6e   : > { %2129 = vsyncadd (%p2717_p12), [#allocation6], 4294966784  ;;  %v2167_v0 = vmov 0.0   ;;  %vm2168_vm0 = vmmov 0   ;;  %v1936_v1 = vld [vmem:[#allocation5] sm:$0xff]   ;;  %v1937_v2 = vld [vmem:[#allocation5 + $0x8] sm:$0xff]   ;;  %v409_v17 = vlaneseq }
  0x6f   : > { %1768 = vmatprep.subr.bf16.mxu0 %v2167_v0  ;;  %1772 = vmatprep.mubr.msk.bf16.mxu0 %vm2168_vm0, %v2167_v0  ;;  %v324_v3 = vld [vmem:[%s281_s27] sm:$0xf]  ;;  %vm348_vm1 = vcmask 261120   ;;  %s2169_s9 = smov 104   ;;  %s2170_s28 = smov 120   ;;  %v2175_v45 = vmov 0  }
  0x70   : > { %1776 = vmatprep.subr.bf16.mxu1 %v2167_v0  ;;  %1778 = vmatprep.mubr.msk.bf16.mxu1 %vm2168_vm0, %v2167_v0  ;;  %v1718_v4 = vld [vmem:[%s2697_s2] ss:$0 sm:$0xff]  ;;  %s2171_s11 = smov 96   ;;  %s2172_s8 = smov 112   ;;  %v2173_v15 = vmov 1983009808  }
  0x71   : > { %1769 = vmatpush3.bf16.msra.mxu0 %v1936_v1  ;;  %v407_v16 = vunpack.c.l.s4 %v2173_v15  ;;  %v2174_v18 = vmov 1934713408   ;;  %v410_v21 = vshrl.u32 %v409_v17, 7  ;;  %vm891_vm2 = vcmask 64512   ;;  %s2176_s15 = smov 64   ;;  %s1717_s19 = sshll.u32 %s2403_s17, 4 }
  0x72   : > { %1770 = vmatprep.subr.bf16.mxu0 %v2167_v0  ;;  %v439_v19 = vunpack.c.l.s4 %v2174_v18  ;;  %vm1124_vm3 = vcmask 60416   ;;  %s2546_s30 = scalar_lea.vmem [#allocation9], %s1717_s19  ;;  %vm1132_vm4 = vcmask 1043456   ;;  %s2177_s18 = smov 16   ;;  %vm1463_vm5 = vcmask 130048  }
  0x73   : > { %v408_v20 = vunpack.c.0.s8 %v407_v16  ;;  %s2178_s14 = smov 8   ;;  %s2179_s10 = smov 24   ;;  %vm1465_vm6 = vcmask 195584  }
  0x74   : > { %v440_v24 = vunpack.c.0.s8 %v439_v19  ;;  %s1745_s20 = sshll.u32 %s2152_s24, 8  ;;  %s1569_s27 = sshll.u32 %s2546_s30, 4  ;;  %s2609_s27 = int_to_ptr.vmem [resolvable:$true] %s1569_s27 }
  0x75   : > { %1771 = vmatpush3.bf16.msra.mxu0 %v1937_v2  ;;  %v2449_v25 = vsub.s32 %v408_v20, %v410_v21  ;;  %p2718_p2 = scmp.ne.s32.totalorder %s2714_s12, 0 }
  0x76   : > { %1782 = vmatprep.subr.bf16.mxu0 %v2167_v0  ;;  %v2451_v26 = vsub.s32 %v440_v24, %v410_v21 }
  0x78   : > { %1773 = vmatmul.mubr.msk.bf16.vlgmr.msra.gmra.mrb[0].mxu0 %vm348_vm1, %v324_v3 }
  0x79   : > { %1784 = vmatprep.mubr.msk.bf16.mxu0 %vm2168_vm0, %v2167_v0 }
 0x14b   : > { %v386_v5 = vpop.f32.mrb[0].mxu0 }
 0x14c   : > { %v387_v6 = vadd.f32 %v1718_v4, %v386_v5  ;;  %v1774_v7 = vpop.f32.mrb[1].mxu0 }
 0x14d   : > { %v389_v8 = vpop.f32.mrb[2].mxu0 }
 0x14e   : > { %v2429_v9 = vpack.c.bf16 %v387_v6, %v387_v6  ;;  %v1775_v10 = vpop.f32.mrb[3].mxu0  ;;  %v2444_v14 = vmul.f32 0.35355338, %v387_v6 }
 0x150   : > { %549 = vrot.lane.b32.xlu1 %v2429_v9, %s2169_s9  ;;  %545 = vrot.lane.b32.xlu0 %v2429_v9, %s2170_s28 }
 0x154   : > { %551 = vrot.lane.b32.xlu1 %v2429_v9, %s2171_s11  ;;  %547 = vrot.lane.b32.xlu0 %v2429_v9, %s2172_s8 }
 0x1c2   : > { %v2435_v11 = vpop.permute.xlu0 %545  ;;  %v2438_v12 = vpop.permute.xlu1 %549 }
 0x1c3   : > { %553 = vrot.lane.b32.xlu0 %v2435_v11, %s2171_s11 }
 0x1c6   : > { %v2440_v13 = vpop.permute.xlu0 %547  ;;  %v552_v22 = vpop.permute.xlu1 %551 }
 0x1c7   : > { %557 = vrot.lane.b32.xlu0 %v2438_v12, %s2171_s11  ;;  %555 = vrot.lane.b32.xlu1 %v2440_v13, %s2171_s11  ;;  %v566_v29 = vrot.slane %v552_v22, %v2449_v25  ;;  %s2042_s11 = scalar_lea.vmem %s2609_s27, 256 }
 0x1c8   : > { %p2043_p8 = scmp.ne.s32.totalorder %s2609_s27, %s2042_s11 }
 0x1ca   : > { %p2044_p1 = pnand %p2043_p8, %p2718_p2 }
 0x1cb   : > { %398 = vrot.lane.b32.xlu0 %v2444_v14, %s2172_s8  ;;  %395 = vrot.lane.b32.xlu1 %v2444_v14, %s2170_s28  ;;  %s1541_s28 = scalar_lea.sflag [#allocation10], %s2403_s17  ;;  %s2180_s8 = smov [#allocation9]  }
 0x1cc   : > { %p2045_p10 = pneg %p2044_p1  ;;  %s2046_s19 = sshll.u32 %s2180_s8, 4  ;;  %s2047_s19 = int_to_ptr.vmem [resolvable:$false] %s2046_s19 }
 0x1cd   : > { %p2049_p3 = scmp.lt.s32.totalorder %s2609_s27, %s2047_s19 }
 0x1cf   : > { %401 = vrot.lane.b32.xlu1 %v2444_v14, %s2169_s9  ;;  %s2607_s9 = scalar_lea.hbm %s2701_s6, %s1745_s20 }
 0x235   : > { %v554_v23 = vpop.permute.xlu0 %553 }
 0x236   : > { %v600_v30 = vrot.slane %v554_v23, %v2449_v25 }
 0x239   : > { %v556_v27 = vpop.permute.xlu1 %555  ;;  %v558_v28 = vpop.permute.xlu0 %557 }
 0x23a   : > { %v574_v31 = vrot.slane %v556_v27, %v2449_v25  ;;  %v608_v32 = vrot.slane %v558_v28, %v2449_v25 }
 0x23c   : > { %v575_v33 = vcombine.low %v566_v29, %v574_v31  ;;  %v576_v34 = vcombine.high %v566_v29, %v574_v31  ;;  %v609_v35 = vcombine.low %v600_v30, %v608_v32  ;;  %v610_v36 = vcombine.high %v600_v30, %v608_v32 }
 0x23d   : > { %v399_v37 = vpop.permute.xlu0 %398  ;;  %v396_v38 = vpop.permute.xlu1 %395 }
 0x23e   : > { %v583_v39 = vrot.slane %v575_v33, %v2451_v26  ;;  %v590_v40 = vrot.slane %v576_v34, %v2451_v26  ;;  %v617_v41 = vrot.slane %v609_v35, %v2451_v26  ;;  %v624_v42 = vrot.slane %v610_v36, %v2451_v26 }
 0x23f   : > { %v404_v43 = vcombine.low %v2444_v14, %v399_v37  ;;  %v405_v44 = vcombine.high %v2444_v14, %v399_v37 }
 0x240   : > { %v591_v46 = vcombine.high %v583_v39, %v2175_v45  ;;  %v592_v47 = vcombine.high %v590_v40, %v2175_v45  ;;  %v631_v48 = vshrl.u32 %v583_v39, 16  ;;  %v647_v49 = vshrl.u32 %v590_v40, 16 }
 0x241   : > { %v625_v50 = vcombine.high %v617_v41, %v2175_v45  ;;  %v626_v51 = vcombine.high %v624_v42, %v2175_v45  ;;  %v629_v52 = vpack.i.b16 %v617_v41, %v583_v39  ;;  %v632_v53 = vshrl.u32 %v617_v41, 16  ;;  %v402_v58 = vpop.permute.xlu1 %401 }
 0x242   : > { %v639_v54 = vshrl.u32 %v591_v46, 16  ;;  %v655_v55 = vshrl.u32 %v592_v47, 16  ;;  %v645_v56 = vpack.i.b16 %v624_v42, %v590_v40  ;;  %v648_v57 = vshrl.u32 %v624_v42, 16 }
 0x243   : > { %v633_v59 = vpack.i.b16 %v632_v53, %v631_v48  ;;  %v637_v60 = vpack.i.b16 %v625_v50, %v591_v46  ;;  %v640_v61 = vshrl.u32 %v625_v50, 16  ;;  %v653_v62 = vpack.i.b16 %v626_v51, %v592_v47 }
 0x244   : > { %v649_v63 = vpack.i.b16 %v648_v57, %v647_v49  ;;  %v656_v1 = vshrl.u32 %v626_v51, 16  ;;  %v659_v2 = vcombine.low %v629_v52, %v645_v56  ;;  %v420_v4 = vcombine.low %v396_v38, %v402_v58 }
 0x245   : > { %v641_v3 = vpack.i.b16 %v640_v61, %v639_v54  ;;  %v421_v5 = vcombine.high %v396_v38, %v402_v58  ;;  %v667_v7 = vcombine.low %v637_v60, %v653_v62  ;;  %v412_v10 = vrot.slane %v404_v43, %v2449_v25 }
 0x246   : > { %v657_v6 = vpack.i.b16 %v656_v1, %v655_v55  ;;  %v684_v8 = vcombine.low %v633_v59, %v649_v63  ;;  %v419_v14 = vrot.slane %v405_v44, %v2449_v25  ;;  %v428_v15 = vrot.slane %v420_v4, %v2449_v25 }
 0x247   : > { %v435_v16 = vrot.slane %v421_v5, %v2449_v25  ;;  %v666_v17 = vrot.slane %v659_v2, %v2449_v25  ;;  %v674_v18 = vrot.slane %v667_v7, %v2449_v25 }
 0x248   : > { %v692_v19 = vcombine.low %v641_v3, %v657_v6  ;;  %v436_v20 = vcombine.low %v412_v10, %v428_v15  ;;  %v437_v21 = vcombine.high %v412_v10, %v428_v15  ;;  %v691_v27 = vrot.slane %v684_v8, %v2449_v25 }
 0x249   : > { %v452_v22 = vcombine.low %v419_v14, %v435_v16  ;;  %v453_v23 = vcombine.high %v419_v14, %v435_v16  ;;  %v675_v24 = vcombine.low %v666_v17, %v674_v18 }
 0x24a   : > { %v699_v28 = vrot.slane %v692_v19, %v2449_v25  ;;  %v444_v29 = vrot.slane %v436_v20, %v2451_v26  ;;  %v451_v30 = vrot.slane %v437_v21, %v2451_v26 }
 0x24b   : > { %v460_v31 = vrot.slane %v452_v22, %v2451_v26  ;;  %v467_v32 = vrot.slane %v453_v23, %v2451_v26  ;;  %v682_v33 = vrot.slane %v675_v24, %v2451_v26 }
 0x24c   : > { %v700_v34 = vcombine.low %v691_v27, %v699_v28  ;;  %v472_v35 = vcombine.low %v444_v29, %v451_v30  ;;  %v1722_v36 = vcombine.high %v444_v29, %v451_v30 }
 0x24d   : > { %v488_v37 = vcombine.low %v460_v31, %v467_v32  ;;  %v1723_v38 = vcombine.high %v460_v31, %v467_v32  ;;  %v712_v46 = vshrl.u32 %v682_v33, 16  ;;  %v683_v53 = vcombine.high %v682_v33, %v2175_v45 }
 0x24e   : > { %v707_v39 = vrot.slane %v700_v34, %v2451_v26  ;;  %v479_v40 = vrot.slane %v472_v35, %v2449_v25  ;;  %v487_v41 = vrot.slane %v1722_v36, %v2449_v25 }
 0x24f   : > { %v495_v42 = vrot.slane %v488_v37, %v2449_v25  ;;  %v503_v43 = vrot.slane %v1723_v38, %v2449_v25  ;;  %v718_v63 = vshrl.u32 %v683_v53, 16 }
 0x250   : > { %v711_v44 = vpack.i.b16 %v707_v39, %v682_v33  ;;  %v713_v47 = vshrl.u32 %v707_v39, 16  ;;  %v708_v48 = vcombine.high %v707_v39, %v2175_v45  ;;  %v504_v49 = vcombine.low %v479_v40, %v487_v41 }
 0x251   : > { %v520_v50 = vcombine.low %v495_v42, %v503_v43  ;;  %v505_v56 = vcombine.high %v479_v40, %v487_v41  ;;  %v521_v57 = vcombine.high %v495_v42, %v503_v43 }
 0x252   : > { %v896_v51 = vsel %vm891_vm2, %v711_v44, 0  ;;  %v714_v52 = vpack.i.b16 %v713_v47, %v712_v46  ;;  %v512_v54 = vrot.slane %v504_v49, %v2451_v26  ;;  %v719_v59 = vshrl.u32 %v708_v48, 16 }
 0x253   : > { %1777 = vmatpush3.bf16.xpose.msra.mxu1 %v896_v51  ;;  %v528_v55 = vrot.slane %v520_v50, %v2451_v26  ;;  %v717_v62 = vpack.i.b16 %v708_v48, %v683_v53  ;;  %v519_v3 = vrot.slane %v505_v56, %v2451_v26  ;;  %v535_v4 = vrot.slane %v521_v57, %v2451_v26 }
 0x254   : > { %v942_v58 = vsel %vm891_vm2, %v714_v52, 0  ;;  %1788 = vmatprep.subr.bf16.mxu1 %v2167_v0  ;;  %v720_v2 = vpack.i.b16 %v719_v59, %v718_v63 }
 0x255   : > { %1783 = vmatpush3.bf16.xpose.msra.mxu0 %v942_v58  ;;  %v536_v60 = vcombine.low %v512_v54, %v528_v55  ;;  %v537_v61 = vcombine.high %v512_v54, %v528_v55  ;;  %v988_v5 = vsel %vm891_vm2, %v717_v62, 0  ;;  %v538_v8 = vcombine.low %v519_v3, %v535_v4 }
 0x256   : > { %1794 = vmatprep.subr.bf16.mxu0 %v2167_v0  ;;  %v1034_v7 = vsel %vm891_vm2, %v720_v2, 0  ;;  %v539_v10 = vcombine.high %v519_v3, %v535_v4 }
 0x257   : > { %v540_v1 = vpack.c.bf16 %v536_v60, %v536_v60  ;;  %v541_v6 = vpack.c.bf16 %v537_v61, %v537_v61  ;;  %v542_v14 = vpack.c.bf16 %v538_v8, %v538_v8 }
 0x258   : > { %v543_v15 = vpack.c.bf16 %v539_v10, %v539_v10 }
 0x25a   : > { %1779 = vmatmul.mubr.msk.bf16.vlgmr.msra.gmra.mrb[0].mxu1 %vm891_vm2, %v540_v1 }
 0x25b   : > { %1789 = vmatpush3.bf16.xpose.msra.mxu1 %v988_v5  ;;  %1790 = vmatprep.mubr.msk.bf16.mxu1 %vm2168_vm0, %v2167_v0 }
 0x25c   : > { %1785 = vmatmul.mubr.msk.bf16.vlgmr.msra.gmra.mrb[4].mxu0 %vm891_vm2, %v541_v6  ;;  %1800 = vmatprep.subr.bf16.mxu1 %v2167_v0 }
 0x25d   : > { %1795 = vmatpush3.bf16.xpose.msra.mxu0 %v1034_v7  ;;  %1796 = vmatprep.mubr.msk.bf16.mxu0 %vm2168_vm0, %v2167_v0 }
 0x25e   : > { %1806 = vmatprep.subr.bf16.mxu0 %v2167_v0 }
 0x262   : > { %1791 = vmatmul.mubr.msk.bf16.vlgmr.msra.gmra.mrb[4].mxu1 %vm891_vm2, %v542_v14 }
 0x263   : > { %1802 = vmatprep.mubr.msk.bf16.mxu1 %vm2168_vm0, %v2167_v0 }
 0x264   : > { %1797 = vmatmul.mubr.msk.bf16.vlgmr.msra.gmra.mrb[8].mxu0 %vm891_vm2, %v543_v15 }
 0x265   : > { %1808 = vmatprep.mubr.msk.bf16.mxu0 %vm2168_vm0, %v2167_v0 }
 0x32d   : > { %v932_v16 = vpop.f32.mrb[0].mxu1 }
 0x32e   : > { %v1780_v17 = vpop.f32.mrb[1].mxu1  ;;  %v1076_v18 = vsel %vm891_vm2, %v932_v16, -inf }
 0x32f   : > { %1077 = vmax.xlane.f32.xlu0 %v1076_v18  ;;  %v935_v19 = vpop.f32.mrb[2].mxu1  ;;  %v978_v20 = vpop.f32.mrb[4].mxu0 }
 0x330   : > { %v1781_v21 = vpop.f32.mrb[3].mxu1  ;;  %v1786_v22 = vpop.f32.mrb[5].mxu0  ;;  %v1079_v23 = vsel %vm891_vm2, %v978_v20, -inf }
 0x331   : > { %1080 = vmax.xlane.f32.xlu1 %v1079_v23  ;;  %v981_v24 = vpop.f32.mrb[6].mxu0 }
 0x332   : > { %v1787_v27 = vpop.f32.mrb[7].mxu0 }
 0x335   : > { %v1024_v28 = vpop.f32.mrb[4].mxu1 }
 0x336   : > { %v1792_v29 = vpop.f32.mrb[5].mxu1  ;;  %v1082_v30 = vsel %vm891_vm2, %v1024_v28, -inf }
 0x337   : > { %1083 = vmax.xlane.f32.xlu0 %v1082_v30  ;;  %v1027_v31 = vpop.f32.mrb[6].mxu1  ;;  %v1070_v32 = vpop.f32.mrb[8].mxu0 }
 0x338   : > { %v1793_v33 = vpop.f32.mrb[7].mxu1  ;;  %v1798_v34 = vpop.f32.mrb[9].mxu0  ;;  %v1085_v37 = vsel %vm891_vm2, %v1070_v32, -inf }
 0x339   : > { %v1073_v35 = vpop.f32.mrb[10].mxu0 }
 0x33a   : > { %v1799_v36 = vpop.f32.mrb[11].mxu0 }
 0x33b   : > { %1086 = vmax.xlane.f32.xlu0 %v1085_v37 }
 0x342   : > { %721 = vrot.lane.b32.xlu1 %v2429_v9, %s2176_s15 }
 0x3bc   : > { %v1078_v38 = vpop.xlane.xlu0 %1077 }
 0x3bd   : > { %v1088_v39 = vsub.f32 %v932_v16, %v1078_v38 }
 0x3be   : > { %v1081_v40 = vpop.xlane.xlu1 %1080 }
 0x3bf   : > { %v1092_v41 = vmul.f32 1.442695, %v1088_v39  ;;  %v1089_v42 = vsub.f32 %v978_v20, %v1081_v40 }
 0x3c1   : > { %1940 = vpow2.f32 %v1092_v41  ;;  %v1094_v43 = vmul.f32 1.442695, %v1089_v42 }
 0x3c3   : > { %1942 = vpow2.f32 %v1094_v43 }
 0x3c4   : > { %v1084_v9 = vpop.xlane.xlu0 %1083 }
 0x3c5   : > { %v1090_v50 = vsub.f32 %v1024_v28, %v1084_v9 }
 0x3c7   : > { %v1096_v52 = vmul.f32 1.442695, %v1090_v50 }
 0x3c8   : > { %v1087_v49 = vpop.xlane.xlu0 %1086 }
 0x3c9   : > { %v1091_v51 = vsub.f32 %v1070_v32, %v1087_v49  ;;  %1944 = vpow2.f32 %v1096_v52 }
 0x3cb   : > { %v1941_v44 = vpop.eup %1940  ;;  %v1098_v53 = vmul.f32 1.442695, %v1091_v51 }
 0x3cc   : > { %v1100_v46 = vsel %vm891_vm2, %v1941_v44, 0.0 }
 0x3cd   : > { %v1943_v47 = vpop.eup %1942  ;;  %1101 = vadd.xlane.f32.xlu1 %v1100_v46  ;;  %1946 = vpow2.f32 %v1098_v53 }
 0x3ce   : > { %v1103_v48 = vsel %vm891_vm2, %v1943_v47, 0.0 }
 0x3cf   : > { %1104 = vadd.xlane.f32.xlu0 %v1103_v48 }
 0x3d3   : > { %v2525_v54 = vpop.eup %1944 }
 0x3d7   : > { %v2527_v55 = vpop.eup %1946 }
 0x3de   : > { %725 = vrot.lane.b32.xlu1 %v2440_v13, %s2176_s15  ;;  %v1106_v13 = vsel %vm891_vm2, %v2525_v54, 0.0 }
 0x3e2   : > { %727 = vrot.lane.b32.xlu1 %v2438_v12, %s2176_s15  ;;  %v1109_v12 = vsel %vm891_vm2, %v2527_v55, 0.0 }
 0x3e5   : > { %723 = vrot.lane.b32.xlu0 %v2435_v11, %s2176_s15  ;;  %v722_v11 = vpop.permute.xlu1 %721 }
 0x3e6   : > { %v736_v59 = vrot.slane %v722_v11, %v2449_v25 }
 0x404   : > { %1107 = vadd.xlane.f32.xlu0 %v1106_v13 }
 0x406   : > { %1110 = vadd.xlane.f32.xlu1 %v1109_v12 }
 0x45a   : > { %v1102_v56 = vpop.xlane.xlu1 %1101 }
 0x45b   : > { %1948 = vrcp.f32 %v1102_v56 }
 0x45c   : > { %v1105_v57 = vpop.xlane.xlu0 %1104 }
 0x45d   : > { %1950 = vrcp.f32 %v1105_v57 }
 0x45e   : > { %v726_v58 = vpop.permute.xlu1 %725 }
 0x45f   : > { %v744_v60 = vrot.slane %v726_v58, %v2449_v25 }
 0x460   : > { %v724_v63 = vpop.permute.xlu0 %723 }
 0x461   : > { %v745_v61 = vcombine.low %v736_v59, %v744_v60  ;;  %v746_v62 = vcombine.high %v736_v59, %v744_v60  ;;  %v770_v4 = vrot.slane %v724_v63, %v2449_v25 }
 0x462   : > { %v728_v1 = vpop.permute.xlu1 %727 }
 0x463   : > { %v753_v2 = vrot.slane %v745_v61, %v2451_v26  ;;  %v778_v3 = vrot.slane %v728_v1, %v2449_v25  ;;  %v760_v6 = vrot.slane %v746_v62, %v2451_v26 }
 0x465   : > { %v1949_v5 = vpop.eup %1948  ;;  %v779_v8 = vcombine.low %v770_v4, %v778_v3  ;;  %v780_v10 = vcombine.high %v770_v4, %v778_v3  ;;  %v761_v15 = vcombine.high %v753_v2, %v2175_v45  ;;  %v762_v20 = vcombine.high %v760_v6, %v2175_v45 }
 0x466   : > { %v1116_v7 = vmul.f32 %v1949_v5, %v1941_v44  ;;  %v801_v21 = vshrl.u32 %v753_v2, 16  ;;  %v817_v22 = vshrl.u32 %v760_v6, 16 }
 0x467   : > { %v1951_v14 = vpop.eup %1950  ;;  %v787_v17 = vrot.slane %v779_v8, %v2451_v26  ;;  %v794_v18 = vrot.slane %v780_v10, %v2451_v26  ;;  %v809_v29 = vshrl.u32 %v761_v15, 16  ;;  %v825_v37 = vshrl.u32 %v762_v20, 16 }
 0x468   : > { %v1117_v16 = vmul.f32 %v1951_v14, %v1943_v47  ;;  %v1120_v19 = vpack.c.bf16 %v1116_v7, %v1116_v7 }
 0x469   : > { %v795_v23 = vcombine.high %v787_v17, %v2175_v45  ;;  %v796_v24 = vcombine.high %v794_v18, %v2175_v45  ;;  %v799_v27 = vpack.i.b16 %v787_v17, %v753_v2  ;;  %v802_v28 = vshrl.u32 %v787_v17, 16 }
 0x46a   : > { %1125 = vst.msk [vmem:[%s2546_s30] sm:$0xf] %vm1124_vm3, %v1120_v19  ;;  %v815_v30 = vpack.i.b16 %v794_v18, %v760_v6  ;;  %v818_v31 = vshrl.u32 %v794_v18, 16  ;;  %v1121_v32 = vpack.c.bf16 %v1117_v16, %v1117_v16 }
 0x46b   : > { %v803_v33 = vpack.i.b16 %v802_v28, %v801_v21  ;;  %v807_v34 = vpack.i.b16 %v795_v23, %v761_v15  ;;  %v810_v35 = vshrl.u32 %v795_v23, 16  ;;  %v823_v36 = vpack.i.b16 %v796_v24, %v762_v20  ;;  %v1938_v15 = vld [vmem:[#allocation7] sm:$0xff]  }
 0x46c   : > { %v819_v38 = vpack.i.b16 %v818_v31, %v817_v22  ;;  %v826_v39 = vshrl.u32 %v796_v24, 16  ;;  %v829_v40 = vcombine.low %v799_v27, %v815_v30  ;;  %1126 = vst.msk [vmem:[%s2546_s30 + $0x4] sm:$0xf] %vm1124_vm3, %v1121_v32 }
 0x46d   : > { %v811_v41 = vpack.i.b16 %v810_v35, %v809_v29  ;;  %v837_v42 = vcombine.low %v807_v34, %v823_v36 }
 0x46e   : > { %v827_v43 = vpack.i.b16 %v826_v39, %v825_v37  ;;  %v854_v44 = vcombine.low %v803_v33, %v819_v38  ;;  %v836_v46 = vrot.slane %v829_v40, %v2449_v25 }
 0x46f   : > { %v844_v47 = vrot.slane %v837_v42, %v2449_v25 }
 0x470   : > { %v862_v48 = vcombine.low %v811_v41, %v827_v43  ;;  %v861_v49 = vrot.slane %v854_v44, %v2449_v25  ;;  %v1939_v43 = vld [vmem:[#allocation7 + $0x8] sm:$0xff]  }
 0x471   : > { %v845_v9 = vcombine.low %v836_v46, %v844_v47 }
 0x472   : > { %v869_v50 = vrot.slane %v862_v48, %v2449_v25 }
 0x473   : > { %v852_v51 = vrot.slane %v845_v9, %v2451_v26 }
 0x474   : > { %v870_v52 = vcombine.low %v861_v49, %v869_v50 }
 0x475   : > { %v853_v53 = vcombine.high %v852_v51, %v2175_v45  ;;  %v882_v11 = vshrl.u32 %v852_v51, 16 }
 0x476   : > { %v877_v13 = vrot.slane %v870_v52, %v2451_v26 }
 0x477   : > { %v888_v58 = vshrl.u32 %v853_v53, 16 }
 0x478   : > { %v881_v12 = vpack.i.b16 %v877_v13, %v852_v51  ;;  %v883_v56 = vshrl.u32 %v877_v13, 16  ;;  %v878_v57 = vcombine.high %v877_v13, %v2175_v45 }
 0x47a   : > { %v1134_v59 = vsel %vm1132_vm4, %v881_v12, 0  ;;  %v884_v60 = vpack.i.b16 %v883_v56, %v882_v11  ;;  %v887_v61 = vpack.i.b16 %v878_v57, %v853_v53  ;;  %v889_v62 = vshrl.u32 %v878_v57, 16 }
 0x47b   : > { %1801 = vmatpush3.bf16.msra.mxu1 %v1134_v59 }
 0x47c   : > { %v1180_v63 = vsel %vm1132_vm4, %v884_v60, 0  ;;  %1812 = vmatprep.subr.bf16.mxu1 %v2167_v0  ;;  %v890_v1 = vpack.i.b16 %v889_v62, %v888_v58  ;;  %v1226_v2 = vsel %vm1132_vm4, %v887_v61, 0 }
 0x47d   : > { %1807 = vmatpush3.bf16.msra.mxu0 %v1180_v63 }
 0x47e   : > { %1803 = vmatmul.mubr.msk.bf16.vlgmr.msra.gmra.mrb[8].mxu1 %vm891_vm2, %v1120_v19  ;;  %1818 = vmatprep.subr.bf16.mxu0 %v2167_v0  ;;  %v1272_v45 = vsel %vm1132_vm4, %v890_v1, 0 }
 0x47f   : > { %1813 = vmatpush3.bf16.msra.mxu1 %v1226_v2  ;;  %1814 = vmatprep.mubr.msk.bf16.mxu1 %vm2168_vm0, %v2167_v0 }
 0x480   : > { %1809 = vmatmul.mubr.msk.bf16.vlgmr.msra.gmra.mrb[12].mxu0 %vm891_vm2, %v1121_v32  ;;  %1824 = vmatprep.subr.bf16.mxu1 %v2167_v0 }
 0x481   : > { %1819 = vmatpush3.bf16.msra.mxu0 %v1272_v45  ;;  %1820 = vmatprep.mubr.msk.bf16.mxu0 %vm2168_vm0, %v2167_v0 }
 0x491   : > { %v1108_v3 = vpop.xlane.xlu0 %1107 }
 0x492   : > { %1952 = vrcp.f32 %v1108_v3 }
 0x493   : > { %v1111_v4 = vpop.xlane.xlu1 %1110 }
 0x494   : > { %1954 = vrcp.f32 %v1111_v4 }
 0x49c   : > { %v1953_v5 = vpop.eup %1952 }
 0x49d   : > { %v1118_v6 = vmul.f32 %v1953_v5, %v2525_v54 }
 0x49e   : > { %v1955_v7 = vpop.eup %1954 }
 0x49f   : > { %v1119_v8 = vmul.f32 %v1955_v7, %v2527_v55  ;;  %v1122_v10 = vpack.c.bf16 %v1118_v6, %v1118_v6 }
 0x4a1   : > { %1127 = vst.msk [vmem:[%s2546_s30 + $0x8] sm:$0xf] %vm1124_vm3, %v1122_v10  ;;  %1815 = vmatmul.mubr.msk.bf16.vlgmr.msra.gmra.mrb[12].mxu1 %vm891_vm2, %v1122_v10  ;;  %v1123_v14 = vpack.c.bf16 %v1119_v8, %v1119_v8 }
 0x4a2   : > { %1828 = vmatprep.mubr.msk.bf16.mxu1 %vm2168_vm0, %v2167_v0  ;;  %1825 = vmatpush3.bf16.msra.mxu1 %v1938_v15 }
 0x4a3   : > { %1128 = vst.msk [vmem:[%s2546_s30 + $0xc] sm:$0xf] %vm1124_vm3, %v1123_v14  ;;  %1821 = vmatmul.mubr.msk.bf16.vlgmr.msra.gmra.mrb[16].mxu0 %vm891_vm2, %v1123_v14  ;;  %1826 = vmatprep.subr.bf16.mxu1 %v2167_v0  ;;  %s2048_s30 = scalar_lea.vmem %s2047_s19, 512 }
 0x4a4   : > { %p2050_p5 = scmp.lt.s32.totalorder %s2048_s30, %s2042_s11 }
 0x4a6   : > { %1827 = vmatpush3.bf16.msra.mxu1 %v1939_v43  ;;  %p2051_p9 = por %p2050_p5, %p2049_p3 }
 0x4a8   : > { %p2052_p11 = pnand %p2051_p9, %p2045_p10 }
 0x551   : > { %v1170_v54 = vpop.f32.mrb[8].mxu1 }
 0x552   : > { %v1804_v16 = vpop.f32.mrb[9].mxu1 }
 0x553   : > { %v1173_v55 = vpop.f32.mrb[10].mxu1  ;;  %v1216_v17 = vpop.f32.mrb[12].mxu0 }
 0x554   : > { %v1805_v18 = vpop.f32.mrb[11].mxu1  ;;  %v1810_v19 = vpop.f32.mrb[13].mxu0 }
 0x555   : > { %v1219_v20 = vpop.f32.mrb[14].mxu0 }
 0x556   : > { %v1811_v21 = vpop.f32.mrb[15].mxu0 }
 0x574   : > { %v1262_v22 = vpop.f32.mrb[12].mxu1 }
 0x575   : > { %v1314_v23 = vcombine.low %v1170_v54, %v1262_v22  ;;  %v1315_v24 = vcombine.high %v1170_v54, %v1262_v22  ;;  %v1816_v27 = vpop.f32.mrb[13].mxu1 }
 0x576   : > { %v1265_v28 = vpop.f32.mrb[14].mxu1  ;;  %v1308_v29 = vpop.f32.mrb[16].mxu0 }
 0x577   : > { %v1330_v30 = vcombine.low %v1216_v17, %v1308_v29  ;;  %v1331_v31 = vcombine.high %v1216_v17, %v1308_v29  ;;  %v1817_v32 = vpop.f32.mrb[15].mxu1  ;;  %v1822_v33 = vpop.f32.mrb[17].mxu0  ;;  %v1322_v0 = vrot.slane %v1314_v23, %v2449_v25  ;;  %v1329_v35 = vrot.slane %v1315_v24, %v2449_v25 }
 0x578   : > { %v1311_v34 = vpop.f32.mrb[18].mxu0 }
 0x579   : > { %v1338_v36 = vrot.slane %v1330_v30, %v2449_v25  ;;  %v1345_v37 = vrot.slane %v1331_v31, %v2449_v25  ;;  %v1823_v38 = vpop.f32.mrb[19].mxu0 }
 0x57b   : > { %v1346_v39 = vcombine.low %v1322_v0, %v1338_v36  ;;  %v1347_v40 = vcombine.high %v1322_v0, %v1338_v36  ;;  %v1362_v41 = vcombine.low %v1329_v35, %v1345_v37  ;;  %v1363_v42 = vcombine.high %v1329_v35, %v1345_v37 }
 0x57d   : > { %v1354_v44 = vrot.slane %v1346_v39, %v2451_v26  ;;  %v1361_v46 = vrot.slane %v1347_v40, %v2451_v26  ;;  %v1370_v47 = vrot.slane %v1362_v41, %v2451_v26  ;;  %v1377_v48 = vrot.slane %v1363_v42, %v2451_v26 }
 0x57f   : > { %v1382_v9 = vcombine.low %v1354_v44, %v1361_v46  ;;  %v1732_v49 = vcombine.high %v1354_v44, %v1361_v46  ;;  %v1398_v50 = vcombine.low %v1370_v47, %v1377_v48  ;;  %v1733_v51 = vcombine.high %v1370_v47, %v1377_v48 }
 0x581   : > { %v1389_v52 = vrot.slane %v1382_v9, %v2449_v25  ;;  %v1397_v53 = vrot.slane %v1732_v49, %v2449_v25  ;;  %v1405_v13 = vrot.slane %v1398_v50, %v2449_v25  ;;  %v1413_v12 = vrot.slane %v1733_v51, %v2449_v25 }
 0x583   : > { %v1415_v11 = vcombine.high %v1389_v52, %v1397_v53  ;;  %v1431_v56 = vcombine.high %v1405_v13, %v1413_v12  ;;  %v1414_v57 = vcombine.low %v1389_v52, %v1397_v53  ;;  %v1430_v58 = vcombine.low %v1405_v13, %v1413_v12 }
 0x585   : > { %v1429_v59 = vrot.slane %v1415_v11, %v2451_v26  ;;  %v1445_v60 = vrot.slane %v1431_v56, %v2451_v26  ;;  %v1422_v61 = vrot.slane %v1414_v57, %v2451_v26  ;;  %v1438_v62 = vrot.slane %v1430_v58, %v2451_v26 }
 0x587   : > { %v1448_v63 = vcombine.low %v1429_v59, %v1445_v60  ;;  %v1447_v1 = vcombine.high %v1422_v61, %v1438_v62  ;;  %v1449_v2 = vcombine.high %v1429_v59, %v1445_v60  ;;  %v1446_v45 = vcombine.low %v1422_v61, %v1438_v62 }
 0x589   : > { %1455 = vrot.lane.b32.xlu1 %v1448_v63, %s2177_s18  ;;  %1451 = vrot.lane.b32.xlu0 %v1447_v1, %s2178_s14 }
 0x58d   : > { %1459 = vrot.lane.b32.xlu0 %v1449_v2, %s2179_s10 }
 0x5fb   : > { %v1452_v25 = vpop.permute.xlu0 %1451  ;;  %v1456_v3 = vpop.permute.xlu1 %1455 }
 0x5fc   : > { %v1462_v4 = vsel %vm891_vm2, %v1446_v45, %v1452_v25 }
 0x5fd   : > { %v1464_v5 = vsel %vm1463_vm5, %v1462_v4, %v1456_v3 }
 0x5ff   : > { %v1460_v26 = vpop.permute.xlu0 %1459 }
 0x600   : > { %v1466_v6 = vsel %vm1465_vm6, %v1464_v5, %v1460_v26 }
 0x601   : > { %v1467_v7 = vpack.c.bf16 %v1466_v6, %v1466_v6 }
 0x603   : > { %1829 = vmatmul.mubr.msk.bf16.vlgmr.msra.gmra.mrb[16].mxu1 %vm348_vm1, %v1467_v7 }
 0x604   : > { %2055 = shalt.err (!%p2052_p11)
}
 0x605   : > { %s2056_s18 = scalar_lea.hbm %s2607_s9, 256  ;;  %s2060_s20 = scalar_lea.hbm %s2701_s6, 512 }
 0x606   : > { %p2057_p0 = scmp.ne.s32.totalorder %s2607_s9, %s2056_s18  ;;  %p2061_p6 = scmp.lt.u32.totalorder %s2607_s9, %s2701_s6 }
 0x607   : > { %p2062_p7 = scmp.lt.u32.totalorder %s2060_s20, %s2056_s18  ;;  %p2064_p8 = scmp.lt.u32.totalorder %s2056_s18, %s2607_s9 }
 0x608   : > { %p2058_p4 = pnand %p2057_p0, %p2718_p2 }
 0x609   : > { %p2063_p12 = por %p2062_p7, %p2061_p6 }
 0x60a   : > { %p2059_p13 = pneg %p2058_p4 }
 0x60b   : > { %p2065_p1 = por %p2064_p8, %p2063_p12 }
 0x60d   : > { %p2066_p10 = pnand %p2065_p1, %p2059_p13 }
 0x60f   : > { %2069 = shalt.err (!%p2066_p10)
}
 0x610   : > { %s2181_s11 = smov 4   ;;  %s1716_s8 = sshll.u32 %s2403_s17, 3  ;;  %v1734_v8 = vld [vmem:[%s2699_s4] ss:$0 sm:$0xff] }
 0x611   : > { %1843 = dma.vmem_to_hbm [thread:$0]  (%p2718_p2), %s2609_s27, 256, %s2607_s9, %s1541_s28, %s2176_s15, %s2176_s15, %s2181_s11  }
 0x612   : > { %s1740_s18 = sshll.u32 %s2152_s24, 7  ;;  %s315_s14 = scalar_lea.vmem [#allocation8], %s1716_s8 }
 0x613   : > { %s1555_s10 = sshll.u32 %s315_s14, 4  ;;  %s2645_s7 = scalar_lea.hbm %s2700_s5, %s1740_s18  ;;  %s2647_s10 = int_to_ptr.vmem [resolvable:$true] %s1555_s10 }
 0x614   : > { %s1536_s24 = scalar_lea.sflag [#allocation4], %s2403_s17  ;;  %s2070_s15 = scalar_lea.vmem %s2647_s10, 128 }
 0x615   : > { %p2071_p3 = scmp.ne.s32.totalorder %s2647_s10, %s2070_s15  ;;  %s2182_s27 = smov [#allocation8]  }
 0x616   : > { %s2074_s9 = sshll.u32 %s2182_s27, 4  ;;  %s2075_s9 = int_to_ptr.vmem [resolvable:$false] %s2074_s9 }
 0x617   : > { %p2072_p5 = pnand %p2071_p3, %p2718_p2  ;;  %s2076_s28 = scalar_lea.vmem %s2075_s9, 256 }
 0x618   : > { %p2077_p11 = scmp.lt.s32.totalorder %s2647_s10, %s2075_s9  ;;  %p2078_p0 = scmp.lt.s32.totalorder %s2076_s28, %s2070_s15 }
 0x619   : > { %p2073_p9 = pneg %p2072_p5 }
 0x61a   : > { %p2079_p4 = por %p2078_p0, %p2077_p11 }
 0x61c   : > { %p2080_p13 = pnand %p2079_p4, %p2073_p9 }
 0x6d6   : > { %v1528_v10 = vpop.f32.mrb[16].mxu1 }
 0x6d7   : > { %v1529_v14 = vadd.f32 %v1734_v8, %v1528_v10  ;;  %v1830_v15 = vpop.f32.mrb[17].mxu1 }
 0x6d8   : > { %v1531_v54 = vpop.f32.mrb[18].mxu1 }
 0x6d9   : > { %v1831_v16 = vpop.f32.mrb[19].mxu1  ;;  %1534 = vst.msk [vmem:[%s315_s14] sm:$0xff] %vm348_vm1, %v1529_v14 }
 0x6da   : > { %2083 = shalt.err (!%p2080_p13)
}
 0x6db   : > { %s2084_s17 = scalar_lea.hbm %s2645_s7, 128  ;;  %s2088_s19 = scalar_lea.hbm %s2700_s5, 256 }
 0x6dc   : > { %p2085_p6 = scmp.ne.s32.totalorder %s2645_s7, %s2084_s17  ;;  %p2089_p8 = scmp.lt.u32.totalorder %s2645_s7, %s2700_s5 }
 0x6dd   : > { %p2090_p1 = scmp.lt.u32.totalorder %s2088_s19, %s2084_s17  ;;  %p2092_p3 = scmp.lt.u32.totalorder %s2084_s17, %s2645_s7 }
 0x6de   : > { %p2086_p7 = pnand %p2085_p6, %p2718_p2 }
 0x6df   : > { %p2091_p10 = por %p2090_p1, %p2089_p8 }
 0x6e0   : > { %p2087_p12 = pneg %p2086_p7 }
 0x6e1   : > { %p2093_p5 = por %p2092_p3, %p2091_p10 }
 0x6e3   : > { %p2094_p9 = pnand %p2093_p5, %p2087_p12 }
 0x6e5   : > { %2097 = shalt.err (!%p2094_p9)
}
 0x6e6   : > { %1842 = dma.vmem_to_hbm [thread:$0]  (%p2718_p2), %s2647_s10, 128, %s2645_s7, %s1536_s24  }
 0x6e7 PF: > { %s2719_s14 = sld [smem:[#allocation15_spill]]  ;;  %s1584_s20 = sand.u32 1, %s2140_s21  }
 0x6e8   : > { %p2721_p0 = scmp.ge.s32.totalorder %s2160_s26, 2  ;;  %s1585_s29 = scalar_lea.sflag [#allocation4], %s1584_s20 }
 0x6ed   : > { %p2720_p11 = scmp.ne.s32.totalorder %s2719_s14, 0 }
 0x6ef   : > { %p1858_p4 = pnand %p2721_p0, %p2720_p11 }
 0x6f1   : > { %2131 = dma.done.wait (!%p1858_p4), %s1585_s29, 128  }
 0x6f2   : > { %2133 = vsyncadd (!%p1858_p4), %s1585_s29, 4294967168  ;;  %s1594_s15 = scalar_lea.sflag [#allocation10], %s1584_s20 }
 0x6f3   : > { %2135 = dma.done.wait (!%p1858_p4), %s1594_s15, 256  }
 0x6f4   : > { %2137 = vsyncadd (!%p1858_p4), %s1594_s15, 4294967040  ;;  %s27_s26 = sadd.s32 1, %s2160_s26   ;;  %s2722_s21 = smov %s2144_s22 }
 0x6f5   : > { %p24_p13 = scmp.ge.s32.totalorder %s27_s26, 4   ;;  %s2723_s22 = smov %s2148_s23 }
 0x6f6   : > { %s2724_s23 = smov %s2360_s13  ;;  %s2725_s24 = smov %s2156_s25 }
 0x6f7   : > { %s2726_s25 = smov %s2728_s16  ;;  %26 = sbr.rel (!%p24_p13) target bundleno = 9 (0x9), region = 110 }
 0x6fe   :  { %1599 = vsyncpa [#allocation3], 1 }
 0x6ff   :  { %1601 = vsyncpa [#allocation3 + $0x1], 1 }
 0x700   :  { %1602 = vsyncpa [#allocation6], 1 }
 0x701   :  { %1603 = vsyncpa [#allocation4], 1 }
 0x702   :  { %1605 = vsyncpa [#allocation4 + $0x1], 1 }
 0x703   :  { %1606 = vsyncpa [#allocation10], 1 }
 0x704   :  { %1608 = vsyncpa [#allocation10 + $0x1], 1 }

</bundles_post_ra>
